<compile_context>
chip_gen: v7x
topology: tpu7x:2x2x1
jax: 0.10.0
libtpu: 0.0.40
codegen_flags: <defaults>
</compile_context>

<pallas_src>
import functools

import jax
import jax.numpy as jnp
from jax import lax
from jax.experimental import pallas as pl
from jax.experimental.pallas import tpu as pltpu

EPS = 1e-5  # PyTorch InstanceNorm2d default (affine=False, biased variance)


def _resblock_kernel(x_ref, w1_ref, w2_ref, p_ref, o_ref, col_ref,
                     *, nb, h, w, c, wcp):
    # x_ref  : (nb, h, wcp)     row-packed input, bf16, lane-padded to wcp
    # w*_ref : (3*wcp, wcp)     stacked banded conv weights (3 vertical taps along K), bf16
    # p_ref  : (wcp, wcp)       per-channel averaging projector (0/1), f32
    # o_ref  : (nb, h, wcp)     row-packed output, f32
    # col_ref: (nb, h, 3*wcp)   VMEM scratch: im2col over the 3 vertical taps, bf16
    inv_hw = 1.0 / float(h * w)
    proj = p_ref[...]
    zrow = jnp.zeros((nb, 1, wcp), jnp.bfloat16)

    def fill_col(rows):
        # rows: (nb, h, wcp) bf16.  Lane block k of col_ref holds input row
        # r+k-1 for output row r; the vertical zero padding is just the two
        # single-row zero writes.  Every lane offset is a multiple of wcp=128,
        # so all stores stay lane-dense (no masked vst).
        col_ref[:, 0:1, 0:wcp] = zrow
        col_ref[:, 1:h, 0:wcp] = rows[:, 0:h - 1, :]
        col_ref[:, :, wcp:2 * wcp] = rows
        col_ref[:, 0:h - 1, 2 * wcp:3 * wcp] = rows[:, 1:h, :]
        col_ref[:, h - 1:h, 2 * wcp:3 * wcp] = zrow

    def conv3x3(w_ref):
        # Single fused matmul per conv: M = nb*h, K = 3*wcp, N = wcp.
        rows = col_ref[...].reshape(nb * h, 3 * wcp)
        out = jnp.dot(rows, w_ref[...], preferred_element_type=jnp.float32)
        return out.reshape(nb, h, wcp)

    def instance_norm_relu(v):
        # v: (nb, h, wcp) f32.  Fused sum / sum-of-squares; ONE projector
        # matmul turns both into per-channel means broadcast back into the
        # row-packed lane layout (zero-padded lanes stay exactly zero).
        s = jnp.sum(v, axis=1)
        sq = jnp.sum(v * v, axis=1)
        stats = jnp.dot(jnp.concatenate([s, sq], axis=0), proj,
                        preferred_element_type=jnp.float32) * inv_hw
        mean, msq = stats[:nb], stats[nb:]
        scale = lax.rsqrt(msq - mean * mean + EPS)
        return jnp.maximum((v - mean[:, None, :]) * scale[:, None, :], 0.0)

    x = x_ref[...]

    # conv1 -> InstanceNorm -> ReLU.  (Conv biases are dropped: a per-channel
    # constant added right before affine-free InstanceNorm cancels exactly.)
    fill_col(x)
    hmid = instance_norm_relu(conv3x3(w1_ref))

    # conv2 + residual -> InstanceNorm -> ReLU
    fill_col(hmid.astype(jnp.bfloat16))
    y = conv3x3(w2_ref) + x.astype(jnp.float32)
    o_ref[...] = instance_norm_relu(y)


def _vmem_capacity_bytes():
    # Generation-aware VMEM budget (v5e/v6e: 128 MiB, v7x: 64 MiB per TC).
    try:
        return int(pltpu.get_tpu_info().vmem_capacity_bytes)
    except Exception:
        return 64 << 20  # conservative v7x fallback


def _pick_batch_block(n, h, wcp, const_bytes, vmem_bytes):
    # Images per grid step, sized against the actual generation's VMEM and
    # counting the (double-buffered) constant weight slabs / projector.
    # Prefer the smallest block that fills the MXU M dimension (>=256 rows)
    # while still leaving >=2 grid steps (v7x megacore + DMA/compute overlap);
    # otherwise take the largest block that fits (v5e/v6e: amortize the
    # ~0.35us/step pipeline overhead, fill M as far as the batch allows).
    per_image = h * wcp * (2 * 2 + 2 * 4 + 3 * 2)  # bf16 in + f32 out (x2 buffers) + im2col
    budget = (3 * vmem_bytes) // 4 - 2 * const_bytes
    cands = [d for d in range(1, n + 1) if n % d == 0 and d * per_image <= budget]
    if not cands:
        return 1
    filled = [d for d in cands if d * h >= 256 and n // d >= 2]
    return min(filled) if filled else max(cands)


def resblock_pallas(x_nchw, w1_hwio, b1, w2_hwio, b2):
    # x_nchw: (N, C, H, W) f32; w*_hwio: (3, 3, C, C); b*: (C,)
    # b1/b2 are accepted for API parity but intentionally unused: a conv bias
    # immediately followed by affine-free InstanceNorm cancels exactly.
    del b1, b2
    N, C, H, W = x_nchw.shape
    WC = W * C
    WCP = ((WC + 127) // 128) * 128   # lane-pad the row-packed width to x128

    # ---- layout prep (plain XLA: one fused transpose/pad/cast, no vertical
    # padding copy of x in HBM any more) ----
    x_rows = jnp.transpose(x_nchw, (0, 2, 3, 1)).reshape(N, H, WC)
    x_rows = jnp.pad(x_rows, ((0, 0), (0, 0), (0, WCP - WC))).astype(jnp.bfloat16)

    def banded_stacked(w_hwio):
        # (3,3,C,C) -> (3*WCP, WCP): per vertical tap kh, a banded (WC, WC)
        # matrix folds the kw taps + channel mixing (implicit horizontal zero
        # padding); the 3 taps are stacked along K for one fused matmul.
        # TODO(synk): for large W*C, block the W dimension (tiles of ~128-256
        # lanes with 1-pixel halo columns) instead of one (WCP, WCP) slab.
        slabs = []
        for kh in range(3):
            m = jnp.zeros((WC, WC), jnp.float32)
            for kw in range(3):
                m = m + jnp.kron(jnp.eye(W, k=1 - kw, dtype=jnp.float32),
                                 w_hwio[kh, kw])
            slabs.append(jnp.pad(m, ((0, WCP - WC), (0, WCP - WC))))
        return jnp.concatenate(slabs, axis=0).astype(jnp.bfloat16)

    w1s, w2s = banded_stacked(w1_hwio), banded_stacked(w2_hwio)
    proj = jnp.kron(jnp.ones((W, W), jnp.float32), jnp.eye(C, dtype=jnp.float32))
    proj = jnp.pad(proj, ((0, WCP - WC), (0, WCP - WC)))              # (WCP, WCP)

    vmem_bytes = _vmem_capacity_bytes()
    const_bytes = 2 * (3 * WCP * WCP * 2) + WCP * WCP * 4
    nb = _pick_batch_block(N, H, WCP, const_bytes, vmem_bytes)
    grid = (N // nb,)
    kernel = functools.partial(_resblock_kernel, nb=nb, h=H, w=W, c=C, wcp=WCP)

    out_rows = pl.pallas_call(
        kernel,
        out_shape=jax.ShapeDtypeStruct((N, H, WCP), jnp.float32),
        grid_spec=pltpu.PrefetchScalarGridSpec(
            num_scalar_prefetch=0,
            grid=grid,
            in_specs=[
                pl.BlockSpec((nb, H, WCP), lambda n: (n, 0, 0)),
                pl.BlockSpec((3 * WCP, WCP), lambda n: (0, 0)),
                pl.BlockSpec((3 * WCP, WCP), lambda n: (0, 0)),
                pl.BlockSpec((WCP, WCP), lambda n: (0, 0)),
            ],
            out_specs=pl.BlockSpec((nb, H, WCP), lambda n: (n, 0, 0)),
            scratch_shapes=[pltpu.VMEM((nb, H, 3 * WCP), jnp.bfloat16)],
        ),
        compiler_params=pltpu.CompilerParams(
            dimension_semantics=("parallel",),
            vmem_limit_bytes=min((3 * vmem_bytes) // 4, 96 * 1024 * 1024),
        ),
    )(x_rows, w1s, w2s, proj)

    out = out_rows[:, :, :WC].reshape(N, H, W, C)
    return jnp.transpose(out, (0, 3, 1, 2))                           # back to NCHW


def resblock_ref(x_nchw, w1_hwio, b1, w2_hwio, b2):
    # Pure-JAX f32 reference matching the PyTorch module semantics (biases kept
    # here, which also verifies numerically that dropping them in the kernel is
    # exact up to fp error).
    x = jnp.transpose(x_nchw, (0, 2, 3, 1))  # NHWC

    def conv(v, w, b):
        return lax.conv_general_dilated(
            v, w, window_strides=(1, 1), padding=((1, 1), (1, 1)),
            dimension_numbers=("NHWC", "HWIO", "NHWC")) + b

    def inorm(v):
        m = jnp.mean(v, axis=(1, 2), keepdims=True)
        var = jnp.mean((v - m) ** 2, axis=(1, 2), keepdims=True)
        return (v - m) * lax.rsqrt(var + EPS)

    h = jax.nn.relu(inorm(conv(x, w1_hwio, b1)))
    y = jax.nn.relu(inorm(conv(h, w2_hwio, b2) + x))
    return jnp.transpose(y, (0, 3, 1, 2))


if __name__ == "__main__":
    N, C, H, W = 2, 4, 16, 16
    key = jax.random.PRNGKey(0)
    kx, kw1, kb1, kw2, kb2 = jax.random.split(key, 5)

    # Deterministic "Conv2d-like" init (uniform with 1/sqrt(fan_in) bound).
    bound = 1.0 / jnp.sqrt(jnp.float32(C * 9))
    x = jax.random.normal(kx, (N, C, H, W), jnp.float32)
    w1 = jax.random.uniform(kw1, (3, 3, C, C), jnp.float32, -bound, bound)
    b1 = jax.random.uniform(kb1, (C,), jnp.float32, -bound, bound)
    w2 = jax.random.uniform(kw2, (3, 3, C, C), jnp.float32, -bound, bound)
    b2 = jax.random.uniform(kb2, (C,), jnp.float32, -bound, bound)

    out = jax.block_until_ready(resblock_pallas(x, w1, b1, w2, b2))
    ref = jax.block_until_ready(resblock_ref(x, w1, b1, w2, b2))

    assert out.shape == (N, C, H, W)
    # Intentional precision trade (per perf review): the input, the conv
    # operands and the residual path route through bf16 on the MXU, so compare
    # against the f32 reference at bf16-level tolerance.
    err = jnp.max(jnp.abs(out - ref))
    assert jnp.allclose(out, ref, rtol=4e-2, atol=4e-2), f"max abs err {err}"
    print("KERNEL_OK")
</pallas_src>

<mosaic_0001>
module attributes {stable_mosaic.version = 11 : i64} {
  func.func @_resblock_kernel(%arg0: i32, %arg1: memref<2x16x128xbf16, #tpu.memory_space<vmem>>, %arg2: memref<384x128xbf16, #tpu.memory_space<vmem>>, %arg3: memref<384x128xbf16, #tpu.memory_space<vmem>>, %arg4: memref<128x128xf32, #tpu.memory_space<vmem>>, %arg5: memref<2x16x128xf32, #tpu.memory_space<vmem>>, %arg6: memref<2x16x384xbf16, #tpu.memory_space<vmem>>) attributes {dimension_semantics = [#tpu.dimension_semantics<parallel>], iteration_bounds = array<i64: 1>, scalar_prefetch = 0 : i64, scratch_operands = 1 : i64, tpu.core_type = #tpu.core_type<tc>, window_params = [{transform_indices = @transform_0, window_bounds = array<i64: 2, 16, 128>}, {pipeline_mode = #tpu.pipeline_mode<synchronous>, transform_indices = @transform_1, window_bounds = array<i64: 384, 128>}, {pipeline_mode = #tpu.pipeline_mode<synchronous>, transform_indices = @transform_2, window_bounds = array<i64: 384, 128>}, {pipeline_mode = #tpu.pipeline_mode<synchronous>, transform_indices = @transform_3, window_bounds = array<i64: 128, 128>}, {transform_indices = @transform_4, window_bounds = array<i64: 2, 16, 128>}]} {
    %c0 = arith.constant 0 : index
    %c0_0 = arith.constant 0 : index
    %0 = vector.load %arg4[%c0, %c0_0] : memref<128x128xf32, #tpu.memory_space<vmem>>, vector<128x128xf32>
    %cst = arith.constant 0.000000e+00 : bf16
    %1 = vector.broadcast %cst : bf16 to vector<2x1x128xbf16>
    %c0_1 = arith.constant 0 : index
    %c0_2 = arith.constant 0 : index
    %c0_3 = arith.constant 0 : index
    %2 = vector.load %arg1[%c0_1, %c0_2, %c0_3] : memref<2x16x128xbf16, #tpu.memory_space<vmem>>, vector<2x16x128xbf16>
    %c0_4 = arith.constant 0 : index
    %c0_5 = arith.constant 0 : index
    %c0_6 = arith.constant 0 : index
    %3 = vector.load %arg6[%c0_4, %c0_5, %c0_6] : memref<2x16x384xbf16, #tpu.memory_space<vmem>>, vector<2x1x128xbf16>
    tpu.vector_store %arg6[%c0_4, %c0_5, %c0_6], %1 {strides = array<i32>} : memref<2x16x384xbf16, #tpu.memory_space<vmem>>, vector<2x1x128xbf16>,
    %4 = vector.extract_strided_slice %2 {offsets = [0, 0, 0], sizes = [2, 15, 128], strides = [1, 1, 1]} : vector<2x16x128xbf16> to vector<2x15x128xbf16>
    %c0_7 = arith.constant 0 : index
    %c1 = arith.constant 1 : index
    %c0_8 = arith.constant 0 : index
    %5 = vector.load %arg6[%c0_7, %c1, %c0_8] : memref<2x16x384xbf16, #tpu.memory_space<vmem>>, vector<2x15x128xbf16>
    tpu.vector_store %arg6[%c0_7, %c1, %c0_8], %4 {strides = array<i32>} : memref<2x16x384xbf16, #tpu.memory_space<vmem>>, vector<2x15x128xbf16>,
    %c0_9 = arith.constant 0 : index
    %c0_10 = arith.constant 0 : index
    %c128 = arith.constant 128 : index
    %6 = vector.load %arg6[%c0_9, %c0_10, %c128] : memref<2x16x384xbf16, #tpu.memory_space<vmem>>, vector<2x16x128xbf16>
    tpu.vector_store %arg6[%c0_9, %c0_10, %c128], %2 {strides = array<i32>} : memref<2x16x384xbf16, #tpu.memory_space<vmem>>, vector<2x16x128xbf16>,
    %7 = vector.extract_strided_slice %2 {offsets = [0, 1, 0], sizes = [2, 15, 128], strides = [1, 1, 1]} : vector<2x16x128xbf16> to vector<2x15x128xbf16>
    %c0_11 = arith.constant 0 : index
    %c0_12 = arith.constant 0 : index
    %c256 = arith.constant 256 : index
    %8 = vector.load %arg6[%c0_11, %c0_12, %c256] : memref<2x16x384xbf16, #tpu.memory_space<vmem>>, vector<2x15x128xbf16>
    tpu.vector_store %arg6[%c0_11, %c0_12, %c256], %7 {strides = array<i32>} : memref<2x16x384xbf16, #tpu.memory_space<vmem>>, vector<2x15x128xbf16>,
    %c0_13 = arith.constant 0 : index
    %c15 = arith.constant 15 : index
    %c256_14 = arith.constant 256 : index
    %9 = vector.load %arg6[%c0_13, %c15, %c256_14] : memref<2x16x384xbf16, #tpu.memory_space<vmem>>, vector<2x1x128xbf16>
    tpu.vector_store %arg6[%c0_13, %c15, %c256_14], %1 {strides = array<i32>} : memref<2x16x384xbf16, #tpu.memory_space<vmem>>, vector<2x1x128xbf16>,
    %c0_15 = arith.constant 0 : index
    %c0_16 = arith.constant 0 : index
    %c0_17 = arith.constant 0 : index
    %10 = vector.load %arg6[%c0_15, %c0_16, %c0_17] : memref<2x16x384xbf16, #tpu.memory_space<vmem>>, vector<2x16x384xbf16>
    %11 = vector.shape_cast %10 : vector<2x16x384xbf16> to vector<32x384xbf16>
    %c0_18 = arith.constant 0 : index
    %c0_19 = arith.constant 0 : index
    %12 = vector.load %arg2[%c0_18, %c0_19] : memref<384x128xbf16, #tpu.memory_space<vmem>>, vector<384x128xbf16>
    %cst_20 = arith.constant dense<0.000000e+00> : vector<32x128xf32>
    %13 = tpu.matmul %11, %12, %cst_20 {dimension_numbers = #tpu.dot_dimension_numbers<[1], [0], [0], [1], [0, 0, 1, 1], [], []>} : vector<32x384xbf16>, vector<384x128xbf16>, vector<32x128xf32> -> vector<32x128xf32>
    %14 = vector.shape_cast %13 : vector<32x128xf32> to vector<2x16x128xf32>
    %cst_21 = arith.constant dense<0.000000e+00> : vector<2x128xf32>
    %15 = vector.multi_reduction <add>, %14, %cst_21 [1] : vector<2x16x128xf32> to vector<2x128xf32>
    %16 = arith.mulf %14, %14 : vector<2x16x128xf32>
    %cst_22 = arith.constant dense<0.000000e+00> : vector<2x128xf32>
    %17 = vector.multi_reduction <add>, %16, %cst_22 [1] : vector<2x16x128xf32> to vector<2x128xf32>
    %18 = tpu.concatenate %15, %17 in 0 : vector<2x128xf32>, vector<2x128xf32> -> vector<4x128xf32>
    %cst_23 = arith.constant dense<0.000000e+00> : vector<4x128xf32>
    %19 = tpu.matmul %18, %0, %cst_23 {dimension_numbers = #tpu.dot_dimension_numbers<[1], [0], [0], [1], [0, 0, 1, 1], [], []>} : vector<4x128xf32>, vector<128x128xf32>, vector<4x128xf32> -> vector<4x128xf32>
    %cst_24 = arith.constant 3.906250e-03 : f32
    %20 = vector.broadcast %cst_24 : f32 to vector<4x128xf32>
    %21 = arith.mulf %19, %20 : vector<4x128xf32>
    %22 = vector.extract_strided_slice %21 {offsets = [0, 0], sizes = [2, 128], strides = [1, 1]} : vector<4x128xf32> to vector<2x128xf32>
    %23 = vector.extract_strided_slice %21 {offsets = [2, 0], sizes = [2, 128], strides = [1, 1]} : vector<4x128xf32> to vector<2x128xf32>
    %24 = arith.mulf %22, %22 : vector<2x128xf32>
    %25 = arith.subf %23, %24 : vector<2x128xf32>
    %cst_25 = arith.constant 9.99999974E-6 : f32
    %26 = vector.broadcast %cst_25 : f32 to vector<2x128xf32>
    %27 = arith.addf %25, %26 : vector<2x128xf32>
    %28 = math.rsqrt %27 : vector<2x128xf32>
    %29 = vector.shape_cast %22 : vector<2x128xf32> to vector<2x1x128xf32>
    %30 = vector.broadcast %29 : vector<2x1x128xf32> to vector<2x16x128xf32>
    %31 = arith.subf %14, %30 : vector<2x16x128xf32>
    %32 = vector.shape_cast %28 : vector<2x128xf32> to vector<2x1x128xf32>
    %33 = vector.broadcast %32 : vector<2x1x128xf32> to vector<2x16x128xf32>
    %34 = arith.mulf %31, %33 : vector<2x16x128xf32>
    %cst_26 = arith.constant 0.000000e+00 : f32
    %35 = vector.broadcast %cst_26 : f32 to vector<2x16x128xf32>
    %36 = arith.maximumf %34, %35 : vector<2x16x128xf32>
    %37 = arith.truncf %36 : vector<2x16x128xf32> to vector<2x16x128xbf16>
    %c0_27 = arith.constant 0 : index
    %c0_28 = arith.constant 0 : index
    %c0_29 = arith.constant 0 : index
    %38 = vector.load %arg6[%c0_27, %c0_28, %c0_29] : memref<2x16x384xbf16, #tpu.memory_space<vmem>>, vector<2x1x128xbf16>
    tpu.vector_store %arg6[%c0_27, %c0_28, %c0_29], %1 {strides = array<i32>} : memref<2x16x384xbf16, #tpu.memory_space<vmem>>, vector<2x1x128xbf16>,
    %39 = vector.extract_strided_slice %37 {offsets = [0, 0, 0], sizes = [2, 15, 128], strides = [1, 1, 1]} : vector<2x16x128xbf16> to vector<2x15x128xbf16>
    %c0_30 = arith.constant 0 : index
    %c1_31 = arith.constant 1 : index
    %c0_32 = arith.constant 0 : index
    %40 = vector.load %arg6[%c0_30, %c1_31, %c0_32] : memref<2x16x384xbf16, #tpu.memory_space<vmem>>, vector<2x15x128xbf16>
    tpu.vector_store %arg6[%c0_30, %c1_31, %c0_32], %39 {strides = array<i32>} : memref<2x16x384xbf16, #tpu.memory_space<vmem>>, vector<2x15x128xbf16>,
    %c0_33 = arith.constant 0 : index
    %c0_34 = arith.constant 0 : index
    %c128_35 = arith.constant 128 : index
    %41 = vector.load %arg6[%c0_33, %c0_34, %c128_35] : memref<2x16x384xbf16, #tpu.memory_space<vmem>>, vector<2x16x128xbf16>
    tpu.vector_store %arg6[%c0_33, %c0_34, %c128_35], %37 {strides = array<i32>} : memref<2x16x384xbf16, #tpu.memory_space<vmem>>, vector<2x16x128xbf16>,
    %42 = vector.extract_strided_slice %37 {offsets = [0, 1, 0], sizes = [2, 15, 128], strides = [1, 1, 1]} : vector<2x16x128xbf16> to vector<2x15x128xbf16>
    %c0_36 = arith.constant 0 : index
    %c0_37 = arith.constant 0 : index
    %c256_38 = arith.constant 256 : index
    %43 = vector.load %arg6[%c0_36, %c0_37, %c256_38] : memref<2x16x384xbf16, #tpu.memory_space<vmem>>, vector<2x15x128xbf16>
    tpu.vector_store %arg6[%c0_36, %c0_37, %c256_38], %42 {strides = array<i32>} : memref<2x16x384xbf16, #tpu.memory_space<vmem>>, vector<2x15x128xbf16>,
    %c0_39 = arith.constant 0 : index
    %c15_40 = arith.constant 15 : index
    %c256_41 = arith.constant 256 : index
    %44 = vector.load %arg6[%c0_39, %c15_40, %c256_41] : memref<2x16x384xbf16, #tpu.memory_space<vmem>>, vector<2x1x128xbf16>
    tpu.vector_store %arg6[%c0_39, %c15_40, %c256_41], %1 {strides = array<i32>} : memref<2x16x384xbf16, #tpu.memory_space<vmem>>, vector<2x1x128xbf16>,
    %c0_42 = arith.constant 0 : index
    %c0_43 = arith.constant 0 : index
    %c0_44 = arith.constant 0 : index
    %45 = vector.load %arg6[%c0_42, %c0_43, %c0_44] : memref<2x16x384xbf16, #tpu.memory_space<vmem>>, vector<2x16x384xbf16>
    %46 = vector.shape_cast %45 : vector<2x16x384xbf16> to vector<32x384xbf16>
    %c0_45 = arith.constant 0 : index
    %c0_46 = arith.constant 0 : index
    %47 = vector.load %arg3[%c0_45, %c0_46] : memref<384x128xbf16, #tpu.memory_space<vmem>>, vector<384x128xbf16>
    %cst_47 = arith.constant dense<0.000000e+00> : vector<32x128xf32>
    %48 = tpu.matmul %46, %47, %cst_47 {dimension_numbers = #tpu.dot_dimension_numbers<[1], [0], [0], [1], [0, 0, 1, 1], [], []>} : vector<32x384xbf16>, vector<384x128xbf16>, vector<32x128xf32> -> vector<32x128xf32>
    %49 = vector.shape_cast %48 : vector<32x128xf32> to vector<2x16x128xf32>
    %50 = arith.extf %2 : vector<2x16x128xbf16> to vector<2x16x128xf32>
    %51 = arith.addf %49, %50 : vector<2x16x128xf32>
    %cst_48 = arith.constant dense<0.000000e+00> : vector<2x128xf32>
    %52 = vector.multi_reduction <add>, %51, %cst_48 [1] : vector<2x16x128xf32> to vector<2x128xf32>
    %53 = arith.mulf %51, %51 : vector<2x16x128xf32>
    %cst_49 = arith.constant dense<0.000000e+00> : vector<2x128xf32>
    %54 = vector.multi_reduction <add>, %53, %cst_49 [1] : vector<2x16x128xf32> to vector<2x128xf32>
    %55 = tpu.concatenate %52, %54 in 0 : vector<2x128xf32>, vector<2x128xf32> -> vector<4x128xf32>
    %cst_50 = arith.constant dense<0.000000e+00> : vector<4x128xf32>
    %56 = tpu.matmul %55, %0, %cst_50 {dimension_numbers = #tpu.dot_dimension_numbers<[1], [0], [0], [1], [0, 0, 1, 1], [], []>} : vector<4x128xf32>, vector<128x128xf32>, vector<4x128xf32> -> vector<4x128xf32>
    %cst_51 = arith.constant 3.906250e-03 : f32
    %57 = vector.broadcast %cst_51 : f32 to vector<4x128xf32>
    %58 = arith.mulf %56, %57 : vector<4x128xf32>
    %59 = vector.extract_strided_slice %58 {offsets = [0, 0], sizes = [2, 128], strides = [1, 1]} : vector<4x128xf32> to vector<2x128xf32>
    %60 = vector.extract_strided_slice %58 {offsets = [2, 0], sizes = [2, 128], strides = [1, 1]} : vector<4x128xf32> to vector<2x128xf32>
    %61 = arith.mulf %59, %59 : vector<2x128xf32>
    %62 = arith.subf %60, %61 : vector<2x128xf32>
    %cst_52 = arith.constant 9.99999974E-6 : f32
    %63 = vector.broadcast %cst_52 : f32 to vector<2x128xf32>
    %64 = arith.addf %62, %63 : vector<2x128xf32>
    %65 = math.rsqrt %64 : vector<2x128xf32>
    %66 = vector.shape_cast %59 : vector<2x128xf32> to vector<2x1x128xf32>
    %67 = vector.broadcast %66 : vector<2x1x128xf32> to vector<2x16x128xf32>
    %68 = arith.subf %51, %67 : vector<2x16x128xf32>
    %69 = vector.shape_cast %65 : vector<2x128xf32> to vector<2x1x128xf32>
    %70 = vector.broadcast %69 : vector<2x1x128xf32> to vector<2x16x128xf32>
    %71 = arith.mulf %68, %70 : vector<2x16x128xf32>
    %cst_53 = arith.constant 0.000000e+00 : f32
    %72 = vector.broadcast %cst_53 : f32 to vector<2x16x128xf32>
    %73 = arith.maximumf %71, %72 : vector<2x16x128xf32>
    %c0_54 = arith.constant 0 : index
    %c0_55 = arith.constant 0 : index
    %c0_56 = arith.constant 0 : index
    %74 = vector.load %arg5[%c0_54, %c0_55, %c0_56] : memref<2x16x128xf32, #tpu.memory_space<vmem>>, vector<2x16x128xf32>
    tpu.vector_store %arg5[%c0_54, %c0_55, %c0_56], %73 {strides = array<i32>} : memref<2x16x128xf32, #tpu.memory_space<vmem>>, vector<2x16x128xf32>,
    return
  }
  func.func @transform_0(%arg0: i32) -> (i32, i32, i32) {
    %c0_i32 = arith.constant 0 : i32
    %c0_i32_0 = arith.constant 0 : i32
    %c0_i32_1 = arith.constant 0 : i32
    return %arg0, %c0_i32, %c0_i32_0 : i32, i32, i32
  }
  func.func @transform_1(%arg0: i32) -> (i32, i32) {
    %c0_i32 = arith.constant 0 : i32
    %c0_i32_0 = arith.constant 0 : i32
    %c0_i32_1 = arith.constant 0 : i32
    return %c0_i32, %c0_i32_0 : i32, i32
  }
  func.func @transform_2(%arg0: i32) -> (i32, i32) {
    %c0_i32 = arith.constant 0 : i32
    %c0_i32_0 = arith.constant 0 : i32
    %c0_i32_1 = arith.constant 0 : i32
    return %c0_i32, %c0_i32_0 : i32, i32
  }
  func.func @transform_3(%arg0: i32) -> (i32, i32) {
    %c0_i32 = arith.constant 0 : i32
    %c0_i32_0 = arith.constant 0 : i32
    %c0_i32_1 = arith.constant 0 : i32
    return %c0_i32, %c0_i32_0 : i32, i32
  }
  func.func @transform_4(%arg0: i32) -> (i32, i32, i32) {
    %c0_i32 = arith.constant 0 : i32
    %c0_i32_0 = arith.constant 0 : i32
    %c0_i32_1 = arith.constant 0 : i32
    return %arg0, %c0_i32, %c0_i32_0 : i32, i32, i32
  }
}

</mosaic_0001>

<bundles_post_ra>
// kernel: tpu_custom_call.1
= control target key start
LH: loop header
LB: loop body
LE: loop exit
PB: predicated region body
PF: predicated region fallthrough
CT: control target
= control target key end

     0   :  { %9 = vsyncpa [#allocation4], 0  ;;  %s2077_s0 = inlined_call_operand.hbm [shape: bf16[2,16,128], index: 0, kind: input, shape index: {}]   ;;  %s2078_s1 = inlined_call_operand.hbm [shape: bf16[384,128], index: 1, kind: input, shape index: {}]   ;;  %s2079_s2 = inlined_call_operand.hbm [shape: bf16[384,128], index: 2, kind: input, shape index: {}]   ;;  %s2080_s3 = inlined_call_operand.hbm [shape: f32[128,128], index: 3, kind: input, shape index: {}]   ;;  %s2081_s4 = inlined_call_operand.hbm [shape: f32[2,16,128], index: 4, kind: output, shape index: {}]  }
   0x1   :  { %10 = vsyncpa [#allocation7], 0 }
   0x2   :  { %11 = vsyncpa [#allocation10], 0 }
   0x3   :  { %12 = vsyncpa [#allocation5], 0  ;;  %s1744_s15 = smov [#allocation6]   ;;  %s1745_s17 = smov [#allocation3]  }
   0x4   :  { %s30_s16 = sshll.u32 %s1744_s15, 4  ;;  %s18_s18 = sshll.u32 %s1745_s17, 4  ;;  %s31_s16 = int_to_ptr.vmem [resolvable:$true] %s30_s16  ;;  %s1782_s18 = int_to_ptr.vmem [resolvable:$true] %s18_s18 }
   0x5   :  { %s1626_s21 = scalar_lea.hbm %s2078_s1, 3072 }
   0x6   :  { %p1627_p0 = scmp.ne.s32.totalorder %s2078_s1, %s1626_s21  ;;  %p1630_p1 = scmp.lt.u32.totalorder %s1626_s21, %s2078_s1 }
   0x8   :  { %p1632_p2 = pnand %p1630_p1, %p1627_p0 }
   0xa   :  { %1635 = shalt.err (!%p1632_p2)
}
   0xb   :  { %s1636_s26 = scalar_lea.vmem %s31_s16, 3072  ;;  %p1641_p4 = scmp.lt.s32.totalorder %s31_s16, %s31_s16 }
   0xc   :  { %p1637_p3 = scmp.ne.s32.totalorder %s31_s16, %s1636_s26  ;;  %p1642_p5 = scmp.lt.s32.totalorder %s1636_s26, %s1636_s26 }
   0xe   :  { %p1643_p6 = por %p1642_p5, %p1641_p4 }
  0x10   :  { %p1644_p7 = pnand %p1643_p6, %p1637_p3 }
  0x12   :  { %1647 = shalt.err (!%p1644_p7)
}
  0x13   :  { %s1746_s27 = smov 64   ;;  %s1747_s28 = smov 4  }
  0x14   :  { %36 = dma.hbm_to_vmem [thread:$0]  %s2078_s1, 3072, %s31_s16, [#allocation7], %s1746_s27, %s1746_s27, %s1747_s28  }
  0x15   :  { %s1648_s7 = scalar_lea.hbm %s2077_s0, 256 }
  0x16   :  { %p1649_p8 = scmp.ne.s32.totalorder %s2077_s0, %s1648_s7  ;;  %p1652_p9 = scmp.lt.u32.totalorder %s1648_s7, %s2077_s0 }
  0x18   :  { %p1654_p10 = pnand %p1652_p9, %p1649_p8 }
  0x1a   :  { %1657 = shalt.err (!%p1654_p10)
}
  0x1b   :  { %s1658_s12 = scalar_lea.vmem %s1782_s18, 256  ;;  %p1663_p12 = scmp.lt.s32.totalorder %s1782_s18, %s1782_s18 }
  0x1c   :  { %p1659_p11 = scmp.ne.s32.totalorder %s1782_s18, %s1658_s12  ;;  %p1664_p13 = scmp.lt.s32.totalorder %s1658_s12, %s1658_s12 }
  0x1e   :  { %p1665_p0 = por %p1664_p13, %p1663_p12 }
  0x20   :  { %p1666_p1 = pnand %p1665_p0, %p1659_p11 }
  0x22   :  { %1669 = shalt.err (!%p1666_p1)
}
  0x23   :  { %24 = dma.hbm_to_vmem [thread:$0]  %s2077_s0, 256, %s1782_s18, [#allocation4], %s1746_s27, %s1746_s27, %s1747_s28  }
  0x24   :  { %s1748_s14 = smov [#allocation8]   ;;  %s1749_s16 = smov [#allocation9]  }
  0x25   :  { %s42_s15 = sshll.u32 %s1748_s14, 4  ;;  %s54_s17 = sshll.u32 %s1749_s16, 4  ;;  %s43_s15 = int_to_ptr.vmem [resolvable:$true] %s42_s15  ;;  %s1819_s17 = int_to_ptr.vmem [resolvable:$true] %s54_s17 }
  0x26   :  { %s1670_s21 = scalar_lea.hbm %s2079_s2, 3072 }
  0x27   :  { %p1671_p2 = scmp.ne.s32.totalorder %s2079_s2, %s1670_s21  ;;  %p1674_p3 = scmp.lt.u32.totalorder %s1670_s21, %s2079_s2 }
  0x29   :  { %p1676_p4 = pnand %p1674_p3, %p1671_p2 }
  0x2b   :  { %1679 = shalt.err (!%p1676_p4)
}
  0x2c   :  { %s1680_s0 = scalar_lea.vmem %s43_s15, 3072  ;;  %p1685_p6 = scmp.lt.s32.totalorder %s43_s15, %s43_s15 }
  0x2d   :  { %p1681_p5 = scmp.ne.s32.totalorder %s43_s15, %s1680_s0  ;;  %p1686_p7 = scmp.lt.s32.totalorder %s1680_s0, %s1680_s0 }
  0x2f   :  { %p1687_p8 = por %p1686_p7, %p1685_p6 }
  0x31   :  { %p1688_p9 = pnand %p1687_p8, %p1681_p5 }
  0x33   :  { %1691 = shalt.err (!%p1688_p9)
}
  0x34   :  { %48 = dma.hbm_to_vmem [thread:$0]  %s2079_s2, 3072, %s43_s15, [#allocation7], %s1746_s27, %s1746_s27, %s1747_s28  }
  0x35   :  { %s1692_s5 = scalar_lea.hbm %s2080_s3, 2048 }
  0x36   :  { %p1693_p10 = scmp.ne.s32.totalorder %s2080_s3, %s1692_s5  ;;  %p1696_p11 = scmp.lt.u32.totalorder %s1692_s5, %s2080_s3 }
  0x38   :  { %p1698_p12 = pnand %p1696_p11, %p1693_p10 }
  0x3a   :  { %1701 = shalt.err (!%p1698_p12)
}
  0x3b   :  { %s1702_s10 = scalar_lea.vmem %s1819_s17, 2048  ;;  %p1707_p0 = scmp.lt.s32.totalorder %s1819_s17, %s1819_s17 }
  0x3c   :  { %p1703_p13 = scmp.ne.s32.totalorder %s1819_s17, %s1702_s10  ;;  %p1708_p1 = scmp.lt.s32.totalorder %s1702_s10, %s1702_s10 }
  0x3e   :  { %p1709_p2 = por %p1708_p1, %p1707_p0 }
  0x40   :  { %p1710_p3 = pnand %p1709_p2, %p1703_p13 }
  0x42   :  { %1713 = shalt.err (!%p1710_p3)
}
  0x43   :  { %s1750_s2 = smov 128   ;;  %s1751_s27 = smov 8  }
  0x44   :  { %60 = dma.hbm_to_vmem [thread:$0]  %s2080_s3, 2048, %s1819_s17, [#allocation10], %s1750_s2, %s1750_s2, %s1751_s27  }
  0x45   :  { %1736 = dma.done.wait [#allocation4], 256  }
  0x46   :  { %1737 = vsyncadd [#allocation4], 4294967040 }
  0x47   :  { %1738 = dma.done.wait [#allocation7], 6144  }
  0x48   :  { %1739 = vsyncadd [#allocation7], 4294961152 }
  0x49   :  { %1740 = dma.done.wait [#allocation10], 2048  }
  0x4a   :  { %1741 = vsyncadd [#allocation10], 4294965248  ;;  %v1570_v0 = vld [vmem:[#allocation6 + $0x40] sm:$0xff]   ;;  %v1573_v3 = vld [vmem:[#allocation6 + $0x48] sm:$0xff]   ;;  %vm95_vm0 = vsmask.f32 256 }
  0x4b   :  { %v1571_v1 = vld [vmem:[#allocation6] sm:$0xff]   ;;  %1289 = vmatprep.subr.bf16.mxu0 %v1570_v0  ;;  %v1574_v4 = vld [vmem:[#allocation6 + $0x8] sm:$0xff]   ;;  %v1576_v6 = vld [vmem:[#allocation6 + $0x50] sm:$0xff]   ;;  %vm94_vm1 = vcmask 1040384   ;;  %vm130_vm3 = vsmask.f32 7938 }
  0x4c   :  { %v1572_v2 = vld [vmem:[#allocation6 + $0x80] sm:$0xff]   ;;  %1290 = vmatpush3.bf16.msra.mxu0 %v1571_v1  ;;  %v1575_v5 = vld [vmem:[#allocation6 + $0x88] sm:$0xff]   ;;  %v1577_v7 = vld [vmem:[#allocation6 + $0x10] sm:$0xff]   ;;  %vm148_vm4 = vsmask.f32 7424  ;;  %vm129_vm5 = vcmask 1047552  }
  0x4d   :  { %1399 = vmatprep.subr.bf16.mxu1 %v1572_v2  ;;  %1291 = vmatprep.subr.bf16.mxu0 %v1573_v3  ;;  %v1578_v8 = vld [vmem:[#allocation6 + $0x90] sm:$0xff]   ;;  %v1579_v9 = vld [vmem:[#allocation6 + $0x58] sm:$0xff]   ;;  %v1582_v12 = vld [vmem:[#allocation6 + $0x60] sm:$0xff]   ;;  %vm156_vm6 = vcmask 1047559   ;;  %vm157_vm7 = vsmask.f32 7966 }
  0x4e   :  { %1400 = vmatpush3.bf16.msra.mxu1 %v1572_v2  ;;  %v1580_v10 = vld [vmem:[#allocation6 + $0x18] sm:$0xff]   ;;  %v1584_v13 = vld [vmem:[#allocation6 + $0xa0] sm:$0xff]   ;;  %v1585_v15 = vld [vmem:[#allocation6 + $0x68] sm:$0xff]   ;;  %v1752_v3 = vmov 0.0|0.0   ;;  %vm1753_vm11 = vmmov 0   ;;  %vm495_vm12 = vcmask 1041409  }
  0x4f   :  { %1401 = vmatprep.subr.bf16.mxu1 %v1575_v5  ;;  %v1581_v11 = vld [vmem:[#allocation6 + $0x98] sm:$0xff]   ;;  %v1583_v14 = vld [vmem:[#allocation6 + $0x20] sm:$0xff]   ;;  %vm1856_vm2 = vmand %vm94_vm1, %vm95_vm0  ;;  %vm500_vm13 = vcmask 1043459   ;;  %vm503_vm14 = vcmask 1041408   ;;  %s1756_s3 = smov [#allocation11]  }
  0x50   :  { %1292 = vmatpush3.bf16.msra.mxu0 %v1574_v4  ;;  %v1587_v17 = vld [vmem:[#allocation6 + $0xa8] sm:$0xff]   ;;  %v1588_v19 = vld [vmem:[#allocation6 + $0x70] sm:$0xff]   ;;  %v1591_v22 = vld [vmem:[#allocation6 + $0x78] sm:$0xff]   ;;  %s1225_s12 = sshll.u32 %s1756_s3, 4  ;;  %s1226_s12 = int_to_ptr.vmem [resolvable:$true] %s1225_s12 }
  0x51   :  { %1293 = vmatprep.subr.bf16.mxu0 %v1576_v6  ;;  %v1586_v18 = vld [vmem:[#allocation6 + $0x28] sm:$0xff]   ;;  %v1589_v20 = vld [vmem:[#allocation6 + $0x30] sm:$0xff]   ;;  %v1862_v24 = vld [vmem:[#allocation3 + $0x8] sm:$0xff]   ;;  %s1714_s1 = scalar_lea.vmem %s1226_s12, 512  ;;  %p1719_p5 = scmp.lt.s32.totalorder %s1226_s12, %s1226_s12 }
  0x52   :  { %1402 = vmatpush3.bf16.msra.mxu1 %v1575_v5  ;;  %v1590_v21 = vld [vmem:[#allocation6 + $0xb0] sm:$0xff]   ;;  %v97_v25 = vld [vmem:[#allocation2] sm:$0x1]  ;;  %v1592_v26 = vld [vmem:[#allocation6 + $0x38] sm:$0xff]   ;;  %v121_v33 = vshrl.u32 %v1862_v24, 16  ;;  %v124_v34 = vshll.u32 %v1862_v24, 16  ;;  %p1715_p4 = scmp.ne.s32.totalorder %s1226_s12, %s1714_s1  ;;  %p1720_p6 = scmp.lt.s32.totalorder %s1714_s1, %s1714_s1 }
  0x53   :  { %1403 = vmatprep.subr.bf16.mxu1 %v1578_v8  ;;  %v1860_v23 = vld [vmem:[#allocation3] sm:$0xff]   ;;  %v98_v27 = vsel %vm1856_vm2, 0, %v97_v25  ;;  %v100_v28 = vld [vmem:[#allocation2 + $0x18] sm:$0x1]  ;;  %vm1875_vm8 = vmand %vm129_vm5, %vm130_vm3 }
  0x54   :  { %1294 = vmatpush3.bf16.msra.mxu0 %v1577_v7  ;;  %v1593_v29 = vld [vmem:[#allocation6 + $0xb8] sm:$0xff]   ;;  %99 = vst [vmem:[#allocation2] sm:$0x1] %v98_v27  ;;  %v101_v30 = vsel %vm1856_vm2, 0, %v100_v28  ;;  %395 = vmatprep.mubr.bf16.mxu0 %v1860_v23  ;;  %v114_v31 = vshrl.u32 %v1860_v23, 16  ;;  %v117_v32 = vshll.u32 %v1860_v23, 16  ;;  %vm1881_vm9 = vmand %vm129_vm5, %vm148_vm4  ;;  %p1721_p7 = por %p1720_p6, %p1719_p5 }
  0x55   :  { %1295 = vmatprep.subr.bf16.mxu0 %v1579_v9  ;;  %102 = vst [vmem:[#allocation2 + $0x18] sm:$0x1] %v101_v30  ;;  %v150_v36 = vld [vmem:[#allocation2 + $0x10] sm:$0xff]  ;;  %v153_v37 = vld [vmem:[#allocation2 + $0x28] sm:$0xff]  ;;  %v144_v40 = vrot.slane %v124_v34, 1  ;;  %v123_v42 = vrot.slane %v121_v33, 7  ;;  %vm1887_vm10 = vmand %vm156_vm6, %vm157_vm7 }
  0x56   :  { %1404 = vmatpush3.bf16.msra.mxu1 %v1578_v8  ;;  %v116_v38 = vrot.slane %v114_v31, 7  ;;  %v142_v39 = vrot.slane %v117_v32, 1  ;;  %v74_v0 = vld [vmem:[#allocation9] sm:$0xff]  ;;  %v75_v1 = vld [vmem:[#allocation9 + $0x8] sm:$0xff]  ;;  %v76_v4 = vld [vmem:[#allocation9 + $0x10] sm:$0xff]  ;;  %p1722_p8 = pnand %p1721_p7, %p1715_p4 }
  0x57   :  { %1405 = vmatprep.subr.bf16.mxu1 %v1581_v11  ;;  %v145_v45 = vor.u32 %v144_v40, %v121_v33  ;;  %v126_v47 = vor.u32 %v124_v34, %v123_v42  ;;  %v1914_v2 = vpack.c.bf16 %v75_v1, %v74_v0  ;;  %v77_v5 = vld [vmem:[#allocation9 + $0x18] sm:$0xff]  ;;  %v78_v7 = vld [vmem:[#allocation9 + $0x20] sm:$0xff]  ;;  %v79_v8 = vld [vmem:[#allocation9 + $0x28] sm:$0xff] }
  0x58   :  { %1296 = vmatpush3.bf16.msra.mxu0 %v1580_v10  ;;  %v119_v43 = vor.u32 %v117_v32, %v116_v38  ;;  %v143_v44 = vor.u32 %v142_v39, %v114_v31  ;;  %v1919_v6 = vpack.c.bf16 %v77_v5, %v76_v4  ;;  %v1923_v9 = vpack.c.bf16 %v79_v8, %v78_v7  ;;  %v80_v10 = vld [vmem:[#allocation9 + $0x30] sm:$0xff] }
  0x59   :  { %1297 = vmatprep.subr.bf16.mxu0 %v1582_v12  ;;  %v154_v50 = vsel %vm1881_vm9, %v145_v45, %v153_v37  ;;  %v84_v16 = vld [vmem:[#allocation9 + $0x50] sm:$0xff] }
  0x5a   :  { %1406 = vmatpush3.bf16.msra.mxu1 %v1581_v11  ;;  %v151_v49 = vsel %vm1881_vm9, %v143_v44, %v150_v36  ;;  %155 = vst [vmem:[#allocation2 + $0x28] sm:$0xff] %v154_v50  ;;  %v81_v11 = vld [vmem:[#allocation9 + $0x38] sm:$0xff]  ;;  %v88_v25 = vld [vmem:[#allocation9 + $0x70] sm:$0xff] }
  0x5b   :  { %1407 = vmatprep.subr.bf16.mxu1 %v1584_v13  ;;  %v132_v48 = vld [vmem:[#allocation2] sm:$0xff]  ;;  %152 = vst [vmem:[#allocation2 + $0x10] sm:$0xff] %v151_v49  ;;  %v1927_v12 = vpack.c.bf16 %v81_v11, %v80_v10 }
  0x5c   :  { %1298 = vmatpush3.bf16.msra.mxu0 %v1583_v14  ;;  %v133_v51 = vsel %vm1875_vm8, %v119_v43, %v132_v48  ;;  %v135_v52 = vld [vmem:[#allocation2 + $0x18] sm:$0xff]  ;;  %v83_v14 = vld [vmem:[#allocation9 + $0x48] sm:$0xff] }
  0x5d   :  { %1299 = vmatprep.subr.bf16.mxu0 %v1585_v15  ;;  %134 = vst [vmem:[#allocation2] sm:$0xff] %v133_v51  ;;  %v136_v53 = vsel %vm1875_vm8, %v126_v47, %v135_v52 }
  0x5e   :  { %1408 = vmatpush3.bf16.msra.mxu1 %v1584_v13  ;;  %137 = vst [vmem:[#allocation2 + $0x18] sm:$0xff] %v136_v53  ;;  %v82_v13 = vld [vmem:[#allocation9 + $0x40] sm:$0xff] }
  0x5f   :  { %1409 = vmatprep.subr.bf16.mxu1 %v1587_v17  ;;  %v1931_v15 = vpack.c.bf16 %v83_v14, %v82_v13 }
  0x60   :  { %1300 = vmatpush3.bf16.msra.mxu0 %v1586_v18  ;;  %v86_v18 = vld [vmem:[#allocation9 + $0x60] sm:$0xff] }
  0x61   :  { %1301 = vmatprep.subr.bf16.mxu0 %v1588_v19  ;;  %v162_v55 = vld [vmem:[#allocation2 + $0x28] sm:$0x80] }
  0x62   :  { %1410 = vmatpush3.bf16.msra.mxu1 %v1587_v17  ;;  %v159_v54 = vld [vmem:[#allocation2 + $0x10] sm:$0x80]  ;;  %v163_v58 = vsel %vm1887_vm10, 0, %v162_v55  ;;  %v85_v17 = vld [vmem:[#allocation9 + $0x58] sm:$0xff] }
  0x63   :  { %1411 = vmatprep.subr.bf16.mxu1 %v1590_v21  ;;  %v160_v57 = vsel %vm1887_vm10, 0, %v159_v54  ;;  %164 = vst [vmem:[#allocation2 + $0x28] sm:$0x80] %v163_v58  ;;  %v1935_v19 = vpack.c.bf16 %v85_v17, %v84_v16 }
  0x64   :  { %1302 = vmatpush3.bf16.msra.mxu0 %v1589_v20  ;;  %v665_v56 = vld [vmem:[#allocation2] sm:$0x1]  ;;  %161 = vst [vmem:[#allocation2 + $0x10] sm:$0x80] %v160_v57  ;;  %v87_v20 = vld [vmem:[#allocation9 + $0x68] sm:$0xff] }
  0x65   :  { %1303 = vmatprep.subr.bf16.mxu0 %v1591_v22  ;;  %v666_v59 = vsel %vm1856_vm2, 0, %v665_v56  ;;  %v668_v60 = vld [vmem:[#allocation2 + $0x18] sm:$0x1]  ;;  %v1940_v22 = vpack.c.bf16 %v87_v20, %v86_v18 }
  0x66   :  { %1412 = vmatpush3.bf16.msra.mxu1 %v1590_v21  ;;  %667 = vst [vmem:[#allocation2] sm:$0x1] %v666_v59  ;;  %v669_v61 = vsel %vm1856_vm2, 0, %v668_v60  ;;  %v1754_v21 = vmov 0.0  }
  0x67   :  { %1413 = vmatprep.subr.bf16.mxu1 %v1593_v29  ;;  %670 = vst [vmem:[#allocation2 + $0x18] sm:$0x1] %v669_v61 }
  0x68   :  { %1304 = vmatpush3.bf16.msra.mxu0 %v1592_v26  ;;  %v89_v26 = vld [vmem:[#allocation9 + $0x78] sm:$0xff] }
  0x69   :  { %1509 = vmatprep.subr.bf16.mxu0 %v1752_v3  ;;  %v1944_v27 = vpack.c.bf16 %v89_v26, %v88_v25 }
  0x6a   :  { %1414 = vmatpush3.bf16.msra.mxu1 %v1593_v29  ;;  %v1910_v63 = vld [vmem:[#allocation2 + $0x28] sm:$0xff] }
  0x6b   :  { %396 = vmatmul.mubr.bf16.vlgmr.msra.gmra.mrb[0].mxu0 %v133_v51  ;;  %v1908_v62 = vld [vmem:[#allocation2 + $0x10] sm:$0xff] }
  0x6c   :  { %403 = vmatprep.mubr.bf16.mxu0 %v1862_v24  ;;  %1415 = vmatprep.mubr.bf16.mxu1 %v1908_v62 }
  0x6d   :  { %1416 = vmatmul.mubr.bf16.vlgmr.msra.gmra.mrb[0].mxu1 %v1910_v63  ;;  %1511 = vmatpush3.bf16.msra.mxu0 %v1914_v2 }
  0x6e   :  { %1512 = vmatprep.subr.bf16.mxu0 %v1752_v3 }
  0x71   :  { %1514 = vmatpush3.bf16.msra.mxu0 %v1919_v6 }
  0x72   :  { %1515 = vmatprep.subr.bf16.mxu0 %v1752_v3 }
  0x73   :  { %404 = vmatmul.mubr.bf16.gmra.mrb[4].mxu0 %v136_v53 }
  0x74   :  { %1451 = vmatprep.mubr.msk.f32.mxu0 %vm1753_vm11, %v1754_v21 }
  0x75   :  { %1517 = vmatpush3.bf16.msra.mxu0 %v1923_v9 }
  0x76   :  { %1518 = vmatprep.subr.bf16.mxu0 %v1752_v3 }
  0x79   :  { %1520 = vmatpush3.bf16.msra.mxu0 %v1927_v12 }
  0x7a   :  { %1521 = vmatprep.subr.bf16.mxu0 %v1752_v3 }
  0x7d   :  { %1523 = vmatpush3.bf16.msra.mxu0 %v1931_v15 }
  0x7e   :  { %1524 = vmatprep.subr.bf16.mxu0 %v1752_v3 }
  0x81   :  { %1526 = vmatpush3.bf16.msra.mxu0 %v1935_v19 }
  0x82   :  { %1527 = vmatprep.subr.bf16.mxu0 %v1752_v3 }
  0x85   :  { %1529 = vmatpush3.bf16.msra.mxu0 %v1940_v22 }
  0x86   :  { %1530 = vmatprep.subr.bf16.mxu0 %v1752_v3 }
  0x89   :  { %1532 = vmatpush3.bf16.msra.mxu0 %v1944_v27 }
 0x13e   :  { %v1305_v28 = vpop.f32.mrb[0].mxu0 }
 0x13f   :  { %v1306_v29 = vpop.f32.mrb[1].mxu0 }
 0x140   :  { %v1307_v30 = vadd.f32 %v1306_v29, %v1305_v28  ;;  %v1308_v31 = vpop.f32.mrb[2].mxu0  ;;  %v1417_v42 = vpop.f32.mrb[0].mxu1 }
 0x141   :  { %v1309_v32 = vpop.f32.mrb[3].mxu0  ;;  %v446_v43 = vpop.f32.mrb[1].mxu1 }
 0x142   :  { %v1310_v33 = vadd.f32 %v1309_v32, %v1308_v31  ;;  %v1950_v45 = vadd.f32 %v1307_v30, %v446_v43  ;;  %v1418_v47 = vpop.f32.mrb[2].mxu1  ;;  %v1601_v43 = vld [vmem:[#allocation8 + $0x10] sm:$0xff]  }
 0x143   :  { %v449_v48 = vpop.f32.mrb[3].mxu1 }
 0x144   :  { %v1954_v50 = vadd.f32 %v1310_v33, %v449_v48  ;;  %v475_v54 = vmul.f32 %v1950_v45, %v1950_v45  ;;  %v1604_v48 = vld [vmem:[#allocation8 + $0x18] sm:$0xff]  }
 0x146   :  { %v1311_v34 = vpop.f32.mrb[4].mxu0  ;;  %v461_v55 = vadd.f32 %v1954_v50, %v1950_v45  ;;  %v476_v56 = vmul.f32 %v1954_v50, %v1954_v50 }
 0x147   :  { %v1312_v36 = vpop.f32.mrb[5].mxu0 }
 0x148   :  { %v1313_v37 = vadd.f32 %v1312_v36, %v1311_v34  ;;  %v1314_v38 = vpop.f32.mrb[6].mxu0  ;;  %v462_v59 = vrot.slane %v461_v55, 4  ;;  %v479_v60 = vadd.f32 %v476_v56, %v475_v54  ;;  %v1609_v54 = vld [vmem:[#allocation8 + $0x68] sm:$0xff]  }
 0x149   :  { %v1315_v39 = vpop.f32.mrb[7].mxu0  ;;  %v1605_v56 = vld [vmem:[#allocation8 + $0x88] sm:$0xff]  }
 0x14a   :  { %v1316_v40 = vadd.f32 %v1315_v39, %v1314_v38  ;;  %v1948_v44 = vadd.f32 %v1417_v42, %v1313_v37  ;;  %v463_v1 = vadd.f32 %v462_v59, %v461_v55  ;;  %v480_v4 = vrot.slane %v479_v60, 4  ;;  %v1596_v37 = vld [vmem:[#allocation8 + $0x40] sm:$0xff]   ;;  %v1598_v39 = vld [vmem:[#allocation8 + $0x48] sm:$0xff]   ;;  %v1600_v42 = vld [vmem:[#allocation8 + $0x50] sm:$0xff]  }
 0x14b   :  { %v1597_v38 = vld [vmem:[#allocation8] sm:$0xff]   ;;  %1344 = vmatprep.subr.bf16.mxu1 %v1596_v37  ;;  %v1610_v55 = vld [vmem:[#allocation8 + $0x28] sm:$0xff]   ;;  %v1608_v59 = vld [vmem:[#allocation8 + $0x90] sm:$0xff]  }
 0x14c   :  { %v1952_v49 = vadd.f32 %v1418_v47, %v1316_v40  ;;  %v477_v51 = vmul.f32 %v1948_v44, %v1948_v44  ;;  %v464_v8 = vrot.slane %v463_v1, 2  ;;  %v481_v10 = vadd.f32 %v480_v4, %v479_v60  ;;  %1345 = vmatpush3.bf16.msra.mxu1 %v1597_v38  ;;  %v1599_v40 = vld [vmem:[#allocation8 + $0x8] sm:$0xff]   ;;  %v1603_v47 = vld [vmem:[#allocation8 + $0x58] sm:$0xff]  }
 0x14d   :  { %1346 = vmatprep.subr.bf16.mxu1 %v1598_v39  ;;  %v1611_v60 = vld [vmem:[#allocation8 + $0x98] sm:$0xff]   ;;  %v1617_v4 = vld [vmem:[#allocation8 + $0xa8] sm:$0xff]  }
 0x14e   :  { %v468_v52 = vadd.f32 %v1952_v49, %v1948_v44  ;;  %v478_v53 = vmul.f32 %v1952_v49, %v1952_v49  ;;  %v465_v14 = vadd.f32 %v464_v8, %v463_v1  ;;  %v482_v16 = vrot.slane %v481_v10, 2  ;;  %v1614_v1 = vld [vmem:[#allocation8 + $0xa0] sm:$0xff]  }
 0x150   :  { %v469_v57 = vrot.slane %v468_v52, 4  ;;  %v486_v58 = vadd.f32 %v478_v53, %v477_v51  ;;  %v466_v20 = vrot.slane %v465_v14, 1  ;;  %v483_v25 = vadd.f32 %v482_v16, %v481_v10  ;;  %1347 = vmatpush3.bf16.msra.mxu1 %v1599_v40  ;;  %v1606_v51 = vld [vmem:[#allocation8 + $0x60] sm:$0xff]  }
 0x151   :  { %1348 = vmatprep.subr.bf16.mxu1 %v1600_v42  ;;  %v1602_v53 = vld [vmem:[#allocation8 + $0x80] sm:$0xff]  }
 0x152   :  { %v470_v61 = vadd.f32 %v469_v57, %v468_v52  ;;  %v487_v0 = vrot.slane %v486_v58, 4  ;;  %v484_v28 = vrot.slane %v483_v25, 1  ;;  %v467_v31 = vadd.f32 %v466_v20, %v465_v14  ;;  %v1607_v52 = vld [vmem:[#allocation8 + $0x20] sm:$0xff]   ;;  %1454 = vmatprep.subr.bf16.mxu0 %v1602_v53  ;;  %v1612_v57 = vld [vmem:[#allocation8 + $0x70] sm:$0xff]  }
 0x153   :  { %v587_v14 = vlaneseq }
 0x154   :  { %v471_v5 = vrot.slane %v470_v61, 2  ;;  %v488_v7 = vadd.f32 %v487_v0, %v486_v58  ;;  %v485_v32 = vadd.f32 %v484_v28, %v483_v25  ;;  %1349 = vmatpush3.bf16.msra.mxu1 %v1601_v43  ;;  %v1613_v58 = vld [vmem:[#allocation8 + $0x30] sm:$0xff]   ;;  %v1616_v0 = vld [vmem:[#allocation8 + $0x38] sm:$0xff]  }
 0x155   :  { %1350 = vmatprep.subr.bf16.mxu1 %v1603_v47  ;;  %v588_v25 = vshrl.u32 %v587_v14, 7 }
 0x156   :  { %v472_v11 = vadd.f32 %v471_v5, %v470_v61  ;;  %v489_v13 = vrot.slane %v488_v7, 2  ;;  %v1615_v61 = vld [vmem:[#allocation8 + $0x78] sm:$0xff]   ;;  %v1618_v5 = vld [vmem:[#allocation8 + $0xb0] sm:$0xff]  }
 0x158   :  { %v473_v17 = vrot.slane %v472_v11, 1  ;;  %v490_v18 = vadd.f32 %v489_v13, %v488_v7  ;;  %1351 = vmatpush3.bf16.msra.mxu1 %v1604_v48  ;;  %v1619_v7 = vld [vmem:[#allocation8 + $0xb8] sm:$0xff]  }
 0x159   :  { %1352 = vmatprep.subr.bf16.mxu1 %v1606_v51 }
 0x15a   :  { %v491_v26 = vrot.slane %v490_v18, 1  ;;  %v474_v29 = vadd.f32 %v473_v17, %v472_v11  ;;  %v1755_v11 = vmov 1966171168  }
 0x15b   :  { %v585_v13 = vunpack.c.l.s4 %v1755_v11 }
 0x15c   :  { %v492_v30 = vadd.f32 %v491_v26, %v490_v18  ;;  %v496_v33 = vsel %vm495_vm12, %v474_v29, %v467_v31  ;;  %1353 = vmatpush3.bf16.msra.mxu1 %v1607_v52 }
 0x15d   :  { %1354 = vmatprep.subr.bf16.mxu1 %v1609_v54  ;;  %v586_v20 = vunpack.c.0.s8 %v585_v13 }
 0x15e   :  { %v501_v34 = vsel %vm500_vm13, %v492_v30, %v485_v32 }
 0x15f   :  { %v504_v36 = vsel %vm503_vm14, %v496_v33, %v501_v34  ;;  %v1972_v29 = vsub.s32 %v586_v20, %v588_v25  ;;  %v1976_v33 = vsub.s32 0, %v588_v25 }
 0x160   :  { %1452 = vmatmul.mubr.f32.vlgmr.msra.gmra.mrb[8].mxu0 %v504_v36  ;;  %1355 = vmatpush3.bf16.msra.mxu1 %v1610_v55 }
 0x161   :  { %1455 = vmatpush3.bf16.msra.mxu0 %v1602_v53  ;;  %1356 = vmatprep.subr.bf16.mxu1 %v1612_v57 }
 0x162   :  { %1456 = vmatprep.subr.bf16.mxu0 %v1605_v56 }
 0x164   :  { %1357 = vmatpush3.bf16.msra.mxu1 %v1613_v58 }
 0x165   :  { %1457 = vmatpush3.bf16.msra.mxu0 %v1605_v56  ;;  %1358 = vmatprep.subr.bf16.mxu1 %v1615_v61 }
 0x166   :  { %1458 = vmatprep.subr.bf16.mxu0 %v1608_v59 }
 0x168   :  { %1359 = vmatpush3.bf16.msra.mxu1 %v1616_v0 }
 0x169   :  { %1459 = vmatpush3.bf16.msra.mxu0 %v1608_v59  ;;  %1533 = vmatprep.subr.bf16.mxu1 %v1752_v3 }
 0x16a   :  { %1460 = vmatprep.subr.bf16.mxu0 %v1611_v60 }
 0x16d   :  { %1461 = vmatpush3.bf16.msra.mxu0 %v1611_v60 }
 0x16e   :  { %1462 = vmatprep.subr.bf16.mxu0 %v1614_v1 }
 0x171   :  { %1463 = vmatpush3.bf16.msra.mxu0 %v1614_v1 }
 0x172   :  { %1464 = vmatprep.subr.bf16.mxu0 %v1617_v4 }
 0x175   :  { %1465 = vmatpush3.bf16.msra.mxu0 %v1617_v4 }
 0x176   :  { %1466 = vmatprep.subr.bf16.mxu0 %v1618_v5 }
 0x179   :  { %1467 = vmatpush3.bf16.msra.mxu0 %v1618_v5 }
 0x17a   :  { %1468 = vmatprep.subr.bf16.mxu0 %v1619_v7 }
 0x17d   :  { %1469 = vmatpush3.bf16.msra.mxu0 %v1619_v7 }
 0x233   :  { %v571_v8 = vpop.f32.mrb[8].mxu0 }
 0x234   :  { %v575_v10 = vmul.f32 0.00390625, %v571_v8  ;;  %v1453_v16 = vpop.f32.mrb[9].mxu0 }
 0x236   :  { %v576_v17 = vmul.f32 %v575_v10, %v575_v10  ;;  %v590_v30 = vrot.slane %v575_v10, %v1972_v29 }
 0x238   :  { %v578_v18 = vrot.slane %v576_v17, 6  ;;  %v591_v31 = vcombine.high %v590_v30, %v590_v30  ;;  %v598_v32 = vrot.slane %v590_v30, %v1972_v29 }
 0x23a   :  { %v580_v26 = vsub.f32 %v575_v10, %v578_v18  ;;  %v605_v36 = vrot.slane %v591_v31, %v1972_v29  ;;  %v609_v38 = vrot.slane %v598_v32, %v1976_v33  ;;  %v690_v18 = vld [vmem:[#allocation2 + $0x18] sm:$0xff] }
 0x23c   :  { %v581_v28 = vadd.f32 1e-05, %v580_v26  ;;  %v613_v42 = vrot.slane %v605_v36, %v1976_v33  ;;  %v616_v48 = vsub.f32 %v1950_v45, %v609_v38  ;;  %v617_v51 = vsub.f32 %v1954_v50, %v609_v38 }
 0x23e   :  { %1622 = vrsqrt.f32 %v581_v28  ;;  %v618_v54 = vsub.f32 %v1948_v44, %v613_v42  ;;  %v619_v55 = vsub.f32 %v1952_v49, %v613_v42  ;;  %v687_v49 = vld [vmem:[#allocation2] sm:$0xff] }
 0x248   :  { %v1623_v34 = vpop.eup %1622 }
 0x249   :  { %v627_v37 = vrot.slane %v1623_v34, %v1972_v29 }
 0x24b   :  { %v628_v39 = vcombine.high %v627_v37, %v627_v37  ;;  %v635_v40 = vrot.slane %v627_v37, %v1972_v29 }
 0x24d   :  { %v642_v43 = vrot.slane %v628_v39, %v1972_v29  ;;  %v643_v47 = vcombine.high %v635_v40, %v635_v40  ;;  %v1011_v40 = vunpack.c.l.bf16 %v1862_v24 }
 0x24f   :  { %v644_v52 = vcombine.high %v642_v43, %v642_v43  ;;  %v648_v53 = vrot.slane %v643_v47, %v1976_v33 }
 0x251   :  { %v652_v56 = vrot.slane %v644_v52, %v1976_v33  ;;  %v655_v57 = vmul.f32 %v648_v53, %v616_v48  ;;  %v656_v58 = vmul.f32 %v648_v53, %v617_v51  ;;  %v1010_v51 = vunpack.c.h.bf16 %v1860_v23 }
 0x253   :  { %v657_v59 = vmul.f32 %v652_v56, %v618_v54  ;;  %v658_v60 = vmul.f32 %v652_v56, %v619_v55  ;;  %v659_v61 = vmax.f32 %v655_v57, 0.0  ;;  %v660_v0 = vmax.f32 %v656_v58, 0.0 }
 0x255   :  { %v661_v1 = vmax.f32 %v657_v59, 0.0  ;;  %v662_v4 = vmax.f32 %v658_v60, 0.0  ;;  %v663_v45 = vpack.c.bf16 %v660_v0, %v659_v61 }
 0x257   :  { %v664_v5 = vpack.c.bf16 %v662_v4, %v661_v1  ;;  %v672_v50 = vshrl.u32 %v663_v45, 16  ;;  %v675_v7 = vshll.u32 %v663_v45, 16  ;;  %943 = vmatprep.mubr.bf16.mxu1 %v663_v45 }
 0x259   :  { %v674_v8 = vrot.slane %v672_v50, 7  ;;  %v679_v10 = vshrl.u32 %v664_v5, 16  ;;  %v682_v44 = vshll.u32 %v664_v5, 16  ;;  %v695_v11 = vrot.slane %v675_v7, 1 }
 0x25b   :  { %v677_v13 = vor.u32 %v675_v7, %v674_v8  ;;  %v681_v14 = vrot.slane %v679_v10, 7  ;;  %v696_v16 = vor.u32 %v695_v11, %v672_v50  ;;  %v697_v17 = vrot.slane %v682_v44, 1 }
 0x25d   :  { %v684_v20 = vor.u32 %v682_v44, %v681_v14  ;;  %v688_v25 = vsel %vm1875_vm8, %v677_v13, %v687_v49  ;;  %v698_v26 = vor.u32 %v697_v17, %v679_v10  ;;  %v702_v28 = vsel %vm1881_vm9, %v696_v16, %v1908_v62 }
 0x25e   :  { %689 = vst [vmem:[#allocation2] sm:$0xff] %v688_v25  ;;  %703 = vst [vmem:[#allocation2 + $0x10] sm:$0xff] %v702_v28  ;;  %944 = vmatmul.mubr.bf16.vlgmr.msra.gmra.mrb[4].mxu1 %v688_v25 }
 0x25f   :  { %v691_v30 = vsel %vm1875_vm8, %v684_v20, %v690_v18  ;;  %v705_v31 = vsel %vm1881_vm9, %v698_v26, %v1910_v63  ;;  %951 = vmatprep.mubr.bf16.mxu1 %v664_v5  ;;  %1535 = vmatpush3.bf16.msra.mxu1 %v1914_v2 }
 0x260   :  { %692 = vst [vmem:[#allocation2 + $0x18] sm:$0xff] %v691_v30  ;;  %706 = vst [vmem:[#allocation2 + $0x28] sm:$0xff] %v705_v31  ;;  %1536 = vmatprep.subr.bf16.mxu1 %v1752_v3 }
 0x263   :  { %1538 = vmatpush3.bf16.msra.mxu1 %v1919_v6 }
 0x264   :  { %1539 = vmatprep.subr.bf16.mxu1 %v1752_v3 }
 0x265   :  { %v707_v62 = vld [vmem:[#allocation2 + $0x10] sm:$0x80] }
 0x266   :  { %952 = vmatmul.mubr.bf16.gmra.mrb[8].mxu1 %v691_v30  ;;  %v708_v35 = vsel %vm1887_vm10, 0, %v707_v62 }
 0x267   :  { %709 = vst [vmem:[#allocation2 + $0x10] sm:$0x80] %v708_v35  ;;  %v710_v32 = vld [vmem:[#allocation2 + $0x28] sm:$0x80]  ;;  %1541 = vmatpush3.bf16.msra.mxu1 %v1923_v9  ;;  %1506 = vmatprep.mubr.msk.f32.mxu1 %vm1753_vm11, %v1754_v21 }
 0x268   :  { %v711_v41 = vsel %vm1887_vm10, 0, %v710_v32  ;;  %1542 = vmatprep.subr.bf16.mxu1 %v1752_v3 }
 0x269   :  { %712 = vst [vmem:[#allocation2 + $0x28] sm:$0x80] %v711_v41 }
 0x26b   :  { %1544 = vmatpush3.bf16.msra.mxu1 %v1927_v12 }
 0x26c   :  { %1545 = vmatprep.subr.bf16.mxu1 %v1752_v3 }
 0x26e   :  { %v715_v63 = vld [vmem:[#allocation2 + $0x10] sm:$0xff] }
 0x26f   :  { %1470 = vmatprep.mubr.bf16.mxu0 %v715_v63  ;;  %1547 = vmatpush3.bf16.msra.mxu1 %v1931_v15 }
 0x270   :  { %v718_v2 = vld [vmem:[#allocation2 + $0x28] sm:$0xff]  ;;  %1548 = vmatprep.subr.bf16.mxu1 %v1752_v3 }
 0x271   :  { %1471 = vmatmul.mubr.bf16.vlgmr.msra.gmra.mrb[12].mxu0 %v718_v2 }
 0x273   :  { %1550 = vmatpush3.bf16.msra.mxu1 %v1935_v19 }
 0x274   :  { %1551 = vmatprep.subr.bf16.mxu1 %v1752_v3 }
 0x277   :  { %1553 = vmatpush3.bf16.msra.mxu1 %v1940_v22  ;;  %v1009_v22 = vunpack.c.l.bf16 %v1860_v23 }
 0x278   :  { %1554 = vmatprep.subr.bf16.mxu1 %v1752_v3 }
 0x27b   :  { %1556 = vmatpush3.bf16.msra.mxu1 %v1944_v27  ;;  %v1012_v27 = vunpack.c.h.bf16 %v1862_v24 }
 0x331   :  { %v1360_v46 = vpop.f32.mrb[4].mxu1 }
 0x332   :  { %v1361_v6 = vpop.f32.mrb[5].mxu1 }
 0x333   :  { %v1362_v9 = vadd.f32 %v1361_v6, %v1360_v46  ;;  %v1363_v12 = vpop.f32.mrb[6].mxu1 }
 0x334   :  { %v1364_v21 = vpop.f32.mrb[7].mxu1 }
 0x335   :  { %v1365_v15 = vadd.f32 %v1364_v21, %v1363_v12 }
 0x339   :  { %v1366_v34 = vpop.f32.mrb[8].mxu1 }
 0x33a   :  { %v1367_v36 = vpop.f32.mrb[9].mxu1 }
 0x33b   :  { %v1368_v37 = vadd.f32 %v1367_v36, %v1366_v34  ;;  %v1369_v38 = vpop.f32.mrb[10].mxu1 }
 0x33c   :  { %v1370_v39 = vpop.f32.mrb[11].mxu1 }
 0x33d   :  { %v1371_v19 = vadd.f32 %v1370_v39, %v1369_v38 }
 0x344   :  { %v1472_v42 = vpop.f32.mrb[12].mxu0 }
 0x345   :  { %v1003_v3 = vadd.f32 %v1472_v42, %v1368_v37  ;;  %v994_v43 = vpop.f32.mrb[13].mxu0 }
 0x346   :  { %v995_v47 = vadd.f32 %v1362_v9, %v994_v43  ;;  %v1473_v48 = vpop.f32.mrb[14].mxu0 }
 0x347   :  { %v2025_v52 = vadd.f32 %v1011_v40, %v1003_v3  ;;  %v1006_v53 = vadd.f32 %v1473_v48, %v1371_v19  ;;  %v997_v54 = vpop.f32.mrb[15].mxu0 }
 0x348   :  { %v2027_v55 = vadd.f32 %v1009_v22, %v995_v47  ;;  %v998_v56 = vadd.f32 %v1365_v15, %v997_v54 }
 0x349   :  { %v2029_v57 = vadd.f32 %v1012_v27, %v1006_v53  ;;  %v1033_v59 = vmul.f32 %v2025_v52, %v2025_v52 }
 0x34a   :  { %v2031_v58 = vadd.f32 %v1010_v51, %v998_v56  ;;  %v1031_v60 = vmul.f32 %v2027_v55, %v2027_v55 }
 0x34b   :  { %v1024_v24 = vadd.f32 %v2029_v57, %v2025_v52  ;;  %v1034_v23 = vmul.f32 %v2029_v57, %v2029_v57 }
 0x34c   :  { %v1017_v61 = vadd.f32 %v2031_v58, %v2027_v55  ;;  %v1032_v0 = vmul.f32 %v2031_v58, %v2031_v58 }
 0x34d   :  { %v1025_v1 = vrot.slane %v1024_v24, 4  ;;  %v1042_v4 = vadd.f32 %v1034_v23, %v1033_v59 }
 0x34e   :  { %v1018_v45 = vrot.slane %v1017_v61, 4  ;;  %v1035_v5 = vadd.f32 %v1032_v0, %v1031_v60 }
 0x34f   :  { %v1026_v50 = vadd.f32 %v1025_v1, %v1024_v24  ;;  %v1043_v7 = vrot.slane %v1042_v4, 4 }
 0x350   :  { %v1019_v8 = vadd.f32 %v1018_v45, %v1017_v61  ;;  %v1036_v10 = vrot.slane %v1035_v5, 4 }
 0x351   :  { %v1027_v44 = vrot.slane %v1026_v50, 2  ;;  %v1044_v11 = vadd.f32 %v1043_v7, %v1042_v4 }
 0x352   :  { %v1020_v49 = vrot.slane %v1019_v8, 2  ;;  %v1037_v13 = vadd.f32 %v1036_v10, %v1035_v5 }
 0x353   :  { %v1028_v14 = vadd.f32 %v1027_v44, %v1026_v50  ;;  %v1045_v16 = vrot.slane %v1044_v11, 2 }
 0x354   :  { %v1021_v17 = vadd.f32 %v1020_v49, %v1019_v8  ;;  %v1038_v18 = vrot.slane %v1037_v13, 2 }
 0x355   :  { %v1029_v20 = vrot.slane %v1028_v14, 1  ;;  %v1046_v25 = vadd.f32 %v1045_v16, %v1044_v11 }
 0x356   :  { %v1022_v26 = vrot.slane %v1021_v17, 1  ;;  %v1039_v28 = vadd.f32 %v1038_v18, %v1037_v13 }
 0x357   :  { %v1047_v30 = vrot.slane %v1046_v25, 1  ;;  %v1030_v62 = vadd.f32 %v1029_v20, %v1028_v14 }
 0x358   :  { %v1023_v31 = vadd.f32 %v1022_v26, %v1021_v17  ;;  %v1040_v35 = vrot.slane %v1039_v28, 1 }
 0x359   :  { %v1048_v32 = vadd.f32 %v1047_v30, %v1046_v25 }
 0x35a   :  { %v1041_v41 = vadd.f32 %v1040_v35, %v1039_v28  ;;  %v1051_v63 = vsel %vm495_vm12, %v1030_v62, %v1023_v31 }
 0x35c   :  { %v1055_v2 = vsel %vm500_vm13, %v1048_v32, %v1041_v41 }
 0x35d   :  { %v1057_v46 = vsel %vm503_vm14, %v1051_v63, %v1055_v2 }
 0x35e   :  { %1507 = vmatmul.mubr.f32.vlgmr.msra.gmra.mrb[12].mxu1 %v1057_v46 }
 0x431   :  { %v1124_v6 = vpop.f32.mrb[12].mxu1 }
 0x432   :  { %v1128_v9 = vmul.f32 0.00390625, %v1124_v6  ;;  %v1508_v12 = vpop.f32.mrb[13].mxu1 }
 0x434   :  { %v1129_v21 = vmul.f32 %v1128_v9, %v1128_v9  ;;  %v1143_v37 = vrot.slane %v1128_v9, %v1972_v29 }
 0x436   :  { %v1131_v15 = vrot.slane %v1129_v21, 6  ;;  %v1144_v38 = vcombine.high %v1143_v37, %v1143_v37  ;;  %v1151_v39 = vrot.slane %v1143_v37, %v1972_v29 }
 0x438   :  { %v1133_v34 = vsub.f32 %v1128_v9, %v1131_v15  ;;  %v1158_v40 = vrot.slane %v1144_v38, %v1972_v29  ;;  %v1162_v22 = vrot.slane %v1151_v39, %v1976_v33 }
 0x43a   :  { %v1134_v36 = vadd.f32 1e-05, %v1133_v34  ;;  %v1166_v27 = vrot.slane %v1158_v40, %v1976_v33  ;;  %v1169_v51 = vsub.f32 %v2027_v55, %v1162_v22  ;;  %v1170_v53 = vsub.f32 %v2031_v58, %v1162_v22 }
 0x43c   :  { %1624 = vrsqrt.f32 %v1134_v36  ;;  %v1171_v59 = vsub.f32 %v2025_v52, %v1166_v27  ;;  %v1172_v24 = vsub.f32 %v2029_v57, %v1166_v27 }
 0x446   :  { %v1625_v19 = vpop.eup %1624 }
 0x447   :  { %v1180_v42 = vrot.slane %v1625_v19, %v1972_v29 }
 0x449   :  { %v1181_v3 = vcombine.high %v1180_v42, %v1180_v42  ;;  %v1188_v43 = vrot.slane %v1180_v42, %v1972_v29 }
 0x44b   :  { %v1195_v47 = vrot.slane %v1181_v3, %v1972_v29  ;;  %v1196_v48 = vcombine.high %v1188_v43, %v1188_v43 }
 0x44d   :  { %v1197_v54 = vcombine.high %v1195_v47, %v1195_v47  ;;  %v1201_v56 = vrot.slane %v1196_v48, %v1976_v33 }
 0x44f   :  { %v1205_v23 = vrot.slane %v1197_v54, %v1976_v33  ;;  %v1208_v60 = vmul.f32 %v1201_v56, %v1169_v51  ;;  %v1209_v61 = vmul.f32 %v1201_v56, %v1170_v53 }
 0x451   :  { %v1210_v0 = vmul.f32 %v1205_v23, %v1171_v59  ;;  %v1211_v29 = vmul.f32 %v1205_v23, %v1172_v24  ;;  %v1212_v1 = vmax.f32 %v1208_v60, 0.0  ;;  %v1213_v4 = vmax.f32 %v1209_v61, 0.0 }
 0x453   :  { %v1214_v55 = vmax.f32 %v1210_v0, 0.0  ;;  %v1215_v45 = vmax.f32 %v1211_v29, 0.0  ;;  %1216 = vst [vmem:[#allocation11] sm:$0xff] %v1212_v1  ;;  %1217 = vst [vmem:[#allocation11 + $0x8] sm:$0xff] %v1213_v4 }
 0x455   :  { %1218 = vst [vmem:[#allocation11 + $0x10] sm:$0xff] %v1214_v55  ;;  %1219 = vst [vmem:[#allocation11 + $0x18] sm:$0xff] %v1215_v45 }
 0x456   :  { %1725 = shalt.err (!%p1722_p8)
}
 0x457   :  { %s1726_s15 = scalar_lea.hbm %s2081_s4, 512 }
 0x458   :  { %p1727_p9 = scmp.ne.s32.totalorder %s2081_s4, %s1726_s15  ;;  %p1730_p10 = scmp.lt.u32.totalorder %s1726_s15, %s2081_s4 }
 0x45a   :  { %p1732_p11 = pnand %p1730_p10, %p1727_p9 }
 0x45c   :  { %1735 = shalt.err (!%p1732_p11)
}
 0x45d   :  { %1231 = dma.vmem_to_hbm [thread:$0]  %s1226_s12, 512, %s2081_s4, [#allocation5], %s1750_s2, %s1750_s2, %s1751_s27  }
 0x45e   :  { %1742 = dma.done.wait [#allocation5], 512  }
 0x45f   :  { %1743 = vsyncadd [#allocation5], 4294966784 }
 0x460   :  { %1235 = vsyncpa [#allocation4], 1 }
 0x461   :  { %1236 = vsyncpa [#allocation7], 1 }
 0x462   :  { %1237 = vsyncpa [#allocation10], 1 }
 0x463   :  { %1238 = vsyncpa [#allocation5], 1 }

</bundles_post_ra>
